<compile_context>
chip_gen: v6e
topology: v6e:2x2x1
jax: 0.10.0
libtpu: 0.0.40
codegen_flags: <defaults>
</compile_context>

<pallas_src>
import functools

import jax
import jax.numpy as jnp
from jax.experimental import pallas as pl
from jax.experimental.pallas import tpu as pltpu

_LANES = 128
_TILE_ROWS = 1024          # (1024, 128) f32 tile = 512 KiB per buffer
_TINY_BATCH = 4096         # below this: fused XLA path beats kernel launch cost
_LANE_KERNEL_MAX_B = 1 << 16  # above this: switch to the dense tiled kernel


def _round_up(a, b):
    return ((a + b - 1) // b) * b


# -----------------------------------------------------------------------------
# Parameter packing (done ONCE per weight update, outside the forward hot path).
# torch nn.Linear layout is [out, in]:
#   [W1[0,0], W1[0,1], W1[1,0], W1[1,1], b1[0], b1[1], W2[0,0], W2[0,1], b2[0]]
# -----------------------------------------------------------------------------
def pack_params(w1_t, b1, w2_t, b2):
    return jnp.concatenate(
        [w1_t.reshape(-1), b1.reshape(-1), w2_t.reshape(-1), b2.reshape(-1)]
    ).astype(jnp.float32)  # f32[9]


def _mlp_math(params_ref, x0, x1):
    # h_j = relu(x0*W1[j,0] + x1*W1[j,1] + b1[j]); y = h0*W2[0,0] + h1*W2[0,1] + b2
    h0 = jnp.maximum(x0 * params_ref[0] + x1 * params_ref[1] + params_ref[4], 0.0)
    h1 = jnp.maximum(x0 * params_ref[2] + x1 * params_ref[3] + params_ref[5], 0.0)
    return h0 * params_ref[6] + h1 * params_ref[7] + params_ref[8]


# -----------------------------------------------------------------------------
# Kernel 1: gridless lane-dense kernel (small/medium batches).
#   params: f32[9] in SMEM, xt: (2, B) in VMEM, out: (1, B) in VMEM.
# -----------------------------------------------------------------------------
def mlp_lane_kernel(params_ref, xt_ref, o_ref):
    x0 = xt_ref[0:1, :]   # (1, B) feature 0, batch on the lane axis
    x1 = xt_ref[1:2, :]   # (1, B) feature 1
    o_ref[...] = _mlp_math(params_ref, x0, x1).astype(o_ref.dtype)


def _forward_lane_impl(params, x):
    B = x.shape[0]
    xt = x.astype(jnp.float32).T          # (2, B); cheap at the B this path serves
    y_t = pl.pallas_call(
        mlp_lane_kernel,
        out_shape=jax.ShapeDtypeStruct((1, B), jnp.float32),
        in_specs=[
            pl.BlockSpec(memory_space=pltpu.MemorySpace.SMEM),   # packed params
            pl.BlockSpec(memory_space=pltpu.MemorySpace.VMEM),   # x^T whole-array
        ],
        out_specs=pl.BlockSpec(memory_space=pltpu.MemorySpace.VMEM),
    )(params, xt)
    return y_t.reshape(B, 1)              # bitcast, not a transpose


_forward_lane = jax.jit(_forward_lane_impl)


# -----------------------------------------------------------------------------
# Kernel 2: tiled kernel on dense (rows, 128) batch layout (large batches).
#   params: f32[9] in SMEM (whole array each step),
#   x0, x1, out: (R_pad, 128) with (TR, 128) blocks, grid over rows ("parallel").
# -----------------------------------------------------------------------------
def mlp_tiled_kernel(params_ref, x0_ref, x1_ref, o_ref):
    o_ref[...] = _mlp_math(params_ref, x0_ref[...], x1_ref[...]).astype(o_ref.dtype)


def _forward_tiled_impl(params, x):
    B = x.shape[0]
    R = pl.cdiv(B, _LANES)                       # rows in the (rows, 128) layout
    TR = min(_TILE_ROWS, _round_up(R, 8))        # f32 tile rows, multiple of 8
    R_pad = _round_up(R, TR)
    B_pad = R_pad * _LANES

    xf = x.astype(jnp.float32)
    x_pad = jnp.pad(xf, ((0, B_pad - B), (0, 0)))
    # TODO(synk): producer-side feature-major layout would avoid this repack.
    x0 = x_pad[:, 0].reshape(R_pad, _LANES)
    x1 = x_pad[:, 1].reshape(R_pad, _LANES)

    y = pl.pallas_call(
        mlp_tiled_kernel,
        out_shape=jax.ShapeDtypeStruct((R_pad, _LANES), jnp.float32),
        grid=(R_pad // TR,),
        in_specs=[
            pl.BlockSpec(memory_space=pltpu.MemorySpace.SMEM),   # packed params
            pl.BlockSpec((TR, _LANES), lambda i: (i, 0)),        # feature-0 slab
            pl.BlockSpec((TR, _LANES), lambda i: (i, 0)),        # feature-1 slab
        ],
        out_specs=pl.BlockSpec((TR, _LANES), lambda i: (i, 0)),
        compiler_params=pltpu.CompilerParams(
            # batch axis is independent -> v7x shards it across its 2 TCs;
            # double-buffered footprint ~3 MiB, safely under every scoped
            # VMEM default (v5e 16 MiB, v6e/v7x 32 MiB), so no vmem override.
            dimension_semantics=("parallel",),
        ),
    )(params, x0, x1)

    return y.reshape(-1, 1)[:B]                  # bitcast + slice off padding


_forward_tiled = jax.jit(_forward_tiled_impl)


# -----------------------------------------------------------------------------
# Tiny-batch fused-XLA fast path (no kernel launch / DMA fixed cost).
# -----------------------------------------------------------------------------
def _forward_jnp_impl(params, x):
    xf = x.astype(jnp.float32)
    x0 = xf[:, 0:1]
    x1 = xf[:, 1:2]
    h0 = jnp.maximum(x0 * params[0] + x1 * params[1] + params[4], 0.0)
    h1 = jnp.maximum(x0 * params[2] + x1 * params[3] + params[5], 0.0)
    return h0 * params[6] + h1 * params[7] + params[8]


_forward_jnp = jax.jit(_forward_jnp_impl)


def custom_nn_forward(x, params):
    """Forward pass matching the PyTorch custom_NN module.

    x      : (B, 2) array
    params : f32[9] from pack_params(f1.weight, f1.bias, f2.weight, f2.bias)
    returns (B, 1) float32
    """
    B = x.shape[0]
    if B <= _TINY_BATCH:
        return _forward_jnp(params, x)
    if B <= _LANE_KERNEL_MAX_B:
        return _forward_lane(params, x)
    return _forward_tiled(params, x)


def init_params(key):
    # Deterministic init mirroring nn.Linear shapes (torch layout [out, in]).
    k1, k2, k3, k4 = jax.random.split(key, 4)
    w1_t = jax.random.uniform(k1, (2, 2), jnp.float32, -0.5, 0.5)
    b1 = jax.random.uniform(k2, (2,), jnp.float32, -0.5, 0.5)
    w2_t = jax.random.uniform(k3, (1, 2), jnp.float32, -0.5, 0.5)
    b2 = jax.random.uniform(k4, (1,), jnp.float32, -0.5, 0.5)
    return w1_t, b1, w2_t, b2


if __name__ == "__main__":
    key = jax.random.PRNGKey(0)
    kx1, kx2, kp = jax.random.split(key, 3)

    w1_t, b1, w2_t, b2 = init_params(kp)
    params = pack_params(w1_t, b1, w2_t, b2)     # packed once, not per call

    def reference(x):
        # Exactly the PyTorch forward math: relu(x @ W1.T + b1) @ W2.T + b2
        return jnp.maximum(x @ w1_t.T + b1, 0.0) @ w2_t.T + b2

    # 1) Tiny XOR-style batch through the gridless lane-dense Pallas kernel.
    B_small = 8
    x_small = jax.random.uniform(kx1, (B_small, 2), jnp.float32, 0.0, 1.0)
    out_small = jax.block_until_ready(_forward_lane(params, x_small))
    assert out_small.shape == (B_small, 1)
    assert jnp.allclose(out_small, reference(x_small), atol=1e-5, rtol=1e-5)

    # 2) Larger (non-multiple-of-128) batch through the tiled Pallas kernel.
    B_big = 2000
    x_big = jax.random.uniform(kx2, (B_big, 2), jnp.float32, 0.0, 1.0)
    out_big = jax.block_until_ready(_forward_tiled(params, x_big))
    assert out_big.shape == (B_big, 1)
    assert jnp.allclose(out_big, reference(x_big), atol=1e-5, rtol=1e-5)

    # 3) Dispatcher (uses the fused-XLA fast path at tiny B, per perf review).
    out_disp = jax.block_until_ready(custom_nn_forward(x_small, params))
    assert jnp.allclose(out_disp, reference(x_small), atol=1e-5, rtol=1e-5)

    print("KERNEL_OK")
</pallas_src>

<mosaic_0001>
module attributes {stable_mosaic.version = 11 : i64} {
  func.func @mlp_lane_kernel(%arg0: memref<9xf32, #tpu.memory_space<smem>>, %arg1: memref<2x8xf32, #tpu.memory_space<vmem>>, %arg2: memref<1x8xf32, #tpu.memory_space<vmem>>) attributes {dimension_semantics = [], scalar_prefetch = 0 : i64, scratch_operands = 0 : i64, tpu.core_type = #tpu.core_type<tc>} {
    %c0 = arith.constant 0 : index
    %c0_0 = arith.constant 0 : index
    %0 = vector.load %arg1[%c0, %c0_0] : memref<2x8xf32, #tpu.memory_space<vmem>>, vector<1x8xf32>
    %c1 = arith.constant 1 : index
    %c0_1 = arith.constant 0 : index
    %1 = vector.load %arg1[%c1, %c0_1] : memref<2x8xf32, #tpu.memory_space<vmem>>, vector<1x8xf32>
    %c0_2 = arith.constant 0 : index
    %2 = memref.load %arg0[%c0_2] : memref<9xf32, #tpu.memory_space<smem>>
    %3 = vector.broadcast %2 : f32 to vector<1x8xf32>
    %4 = arith.mulf %0, %3 : vector<1x8xf32>
    %c1_3 = arith.constant 1 : index
    %5 = memref.load %arg0[%c1_3] : memref<9xf32, #tpu.memory_space<smem>>
    %6 = vector.broadcast %5 : f32 to vector<1x8xf32>
    %7 = arith.mulf %1, %6 : vector<1x8xf32>
    %8 = arith.addf %4, %7 : vector<1x8xf32>
    %c4 = arith.constant 4 : index
    %9 = memref.load %arg0[%c4] : memref<9xf32, #tpu.memory_space<smem>>
    %10 = vector.broadcast %9 : f32 to vector<1x8xf32>
    %11 = arith.addf %8, %10 : vector<1x8xf32>
    %cst = arith.constant 0.000000e+00 : f32
    %12 = vector.broadcast %cst : f32 to vector<1x8xf32>
    %13 = arith.maximumf %11, %12 : vector<1x8xf32>
    %c2 = arith.constant 2 : index
    %14 = memref.load %arg0[%c2] : memref<9xf32, #tpu.memory_space<smem>>
    %15 = vector.broadcast %14 : f32 to vector<1x8xf32>
    %16 = arith.mulf %0, %15 : vector<1x8xf32>
    %c3 = arith.constant 3 : index
    %17 = memref.load %arg0[%c3] : memref<9xf32, #tpu.memory_space<smem>>
    %18 = vector.broadcast %17 : f32 to vector<1x8xf32>
    %19 = arith.mulf %1, %18 : vector<1x8xf32>
    %20 = arith.addf %16, %19 : vector<1x8xf32>
    %c5 = arith.constant 5 : index
    %21 = memref.load %arg0[%c5] : memref<9xf32, #tpu.memory_space<smem>>
    %22 = vector.broadcast %21 : f32 to vector<1x8xf32>
    %23 = arith.addf %20, %22 : vector<1x8xf32>
    %cst_4 = arith.constant 0.000000e+00 : f32
    %24 = vector.broadcast %cst_4 : f32 to vector<1x8xf32>
    %25 = arith.maximumf %23, %24 : vector<1x8xf32>
    %c6 = arith.constant 6 : index
    %26 = memref.load %arg0[%c6] : memref<9xf32, #tpu.memory_space<smem>>
    %27 = vector.broadcast %26 : f32 to vector<1x8xf32>
    %28 = arith.mulf %13, %27 : vector<1x8xf32>
    %c7 = arith.constant 7 : index
    %29 = memref.load %arg0[%c7] : memref<9xf32, #tpu.memory_space<smem>>
    %30 = vector.broadcast %29 : f32 to vector<1x8xf32>
    %31 = arith.mulf %25, %30 : vector<1x8xf32>
    %32 = arith.addf %28, %31 : vector<1x8xf32>
    %c8 = arith.constant 8 : index
    %33 = memref.load %arg0[%c8] : memref<9xf32, #tpu.memory_space<smem>>
    %34 = vector.broadcast %33 : f32 to vector<1x8xf32>
    %35 = arith.addf %32, %34 : vector<1x8xf32>
    %c0_5 = arith.constant 0 : index
    %c0_6 = arith.constant 0 : index
    %36 = vector.load %arg2[%c0_5, %c0_6] : memref<1x8xf32, #tpu.memory_space<vmem>>, vector<1x8xf32>
    tpu.vector_store %arg2[%c0_5, %c0_6], %35 {strides = array<i32>} : memref<1x8xf32, #tpu.memory_space<vmem>>, vector<1x8xf32>,
    return
  }
}

</mosaic_0001>

<bundles_post_ra>
// kernel: _forward_lane_impl.1
= control target key start
LH: loop header
LB: loop body
LE: loop exit
PB: predicated region body
PF: predicated region fallthrough
CT: control target
= control target key end

     0   :  { %7 = vsyncpa [#allocation4], 0  ;;  %s151_s0 = inlined_call_operand.vmem [shape: f32[9], index: 0, kind: input, shape index: {}]   ;;  %s152_s1 = inlined_call_operand.vmem [shape: f32[2,8], index: 1, kind: input, shape index: {}]   ;;  %s153_s2 = inlined_call_operand.hbm [shape: f32[1,8], index: 2, kind: output, shape index: {}]  }
   0x1   :  { %8 = vsyncpa [#allocation3], 0  ;;  %s15_s11 = sshll.u32 %s151_s0, 4  ;;  %s16_s11 = int_to_ptr.vmem [resolvable:$true] %s15_s11 }
   0x2   :  { %s86_s12 = scalar_lea.vmem %s16_s11, 16  ;;  %p91_p1 = scmp.lt.s32.totalorder %s16_s11, %s16_s11 }
   0x3   :  { %p87_p0 = scmp.ne.s32.totalorder %s16_s11, %s86_s12  ;;  %p92_p2 = scmp.lt.s32.totalorder %s86_s12, %s86_s12 }
   0x5   :  { %p93_p3 = por %p92_p2, %p91_p1 }
   0x7   :  { %p94_p4 = pnand %p93_p3, %p87_p0 }
   0x9   :  { %97 = shalt.err (!%p94_p4)
}
   0xa   :  { %s122_s13 = smov [#allocation2]  }
   0xb   :  { %18 = dma.vmem_to_smem %s16_s11, 16, %s122_s13, [#allocation4]  }
   0xc   :  { %118 = dma.done.wait [#allocation4], 16  }
   0xd   :  { %119 = vsyncadd [#allocation4], 4294967280 }
   0xe   :  { %24 = sfence }
   0xf   :  { %s27_s14 = sld [smem:[#allocation2]]  ;;  %v25_v0 = vld [vmem:[%s152_s1] sm:$0x1]  ;;  %v26_v1 = vld [vmem:[%s152_s1 + $0x1] sm:$0x1]  ;;  %s123_s1 = smov [#allocation5]  }
  0x10   :  { %s76_s15 = sld [smem:[#allocation2 + $0x1]]  ;;  %s67_s26 = sshll.u32 %s123_s1, 4  ;;  %vm59_vm0 = vcmask 57344   ;;  %s68_s26 = int_to_ptr.vmem [resolvable:$true] %s67_s26 }
  0x11   :  { %s77_s16 = sld [smem:[#allocation2 + $0x4]]  ;;  %s98_s27 = scalar_lea.vmem %s68_s26, 16 }
  0x12   :  { %s78_s17 = sld [smem:[#allocation2 + $0x2]]  ;;  %p99_p5 = scmp.ne.s32.totalorder %s68_s26, %s98_s27 }
  0x13   :  { %s79_s0 = sld [smem:[#allocation2 + $0x3]]  ;;  %s102_s28 = scalar_lea.vmem %s68_s26, 32 }
  0x14   :  { %s80_s22 = sld [smem:[#allocation2 + $0x5]]  ;;  %p103_p6 = scmp.lt.s32.totalorder %s68_s26, %s68_s26 }
  0x15   :  { %v28_v2 = vstv %s27_s14  ;;  %s81_s23 = sld [smem:[#allocation2 + $0x6]]  ;;  %p104_p7 = scmp.lt.s32.totalorder %s102_s28, %s98_s27 }
  0x16   :  { %v29_v3 = vmul.f32 %v28_v2, %v25_v0  ;;  %v31_v4 = vstv %s76_s15  ;;  %s82_s24 = sld [smem:[#allocation2 + $0x7]] }
  0x17   :  { %v32_v5 = vmul.f32 %v31_v4, %v26_v1  ;;  %v35_v6 = vstv %s77_s16  ;;  %s83_s25 = sld [smem:[#allocation2 + $0x8]]  ;;  %p105_p8 = por %p104_p7, %p103_p6 }
  0x18   :  { %v39_v7 = vstv %s78_s17 }
  0x19   :  { %v33_v8 = vadd.f32 %v32_v5, %v29_v3  ;;  %v40_v9 = vmul.f32 %v39_v7, %v25_v0  ;;  %v42_v10 = vstv %s79_s0  ;;  %p106_p9 = pnand %p105_p8, %p99_p5 }
  0x1a   :  { %v43_v11 = vmul.f32 %v42_v10, %v26_v1  ;;  %v46_v13 = vstv %s80_s22 }
  0x1b   :  { %v36_v12 = vadd.f32 %v35_v6, %v33_v8  ;;  %v50_v16 = vstv %s81_s23 }
  0x1c   :  { %v44_v14 = vadd.f32 %v43_v11, %v40_v9  ;;  %v53_v18 = vstv %s82_s24 }
  0x1d   :  { %v37_v15 = vmax.f32 %v36_v12, 0.0  ;;  %v57_v22 = vstv %s83_s25 }
  0x1e   :  { %v47_v17 = vadd.f32 %v46_v13, %v44_v14 }
  0x1f   :  { %v51_v20 = vmul.f32 %v50_v16, %v37_v15 }
  0x20   :  { %v48_v19 = vmax.f32 %v47_v17, 0.0 }
  0x22   :  { %v54_v21 = vmul.f32 %v53_v18, %v48_v19 }
  0x24   :  { %v55_v23 = vadd.f32 %v54_v21, %v51_v20 }
  0x26   :  { %v58_v24 = vadd.f32 %v57_v22, %v55_v23 }
  0x28   :  { %60 = vst.msk [vmem:[#allocation5] sm:$0x1] %vm59_vm0, %v58_v24 }
  0x29   :  { %109 = shalt.err (!%p106_p9)
}
  0x2a   :  { %70 = dma.vmem_to_hbm [thread:$0]  %s68_s26, 16, %s153_s2, [#allocation3]  }
  0x2b   :  { %120 = dma.done.wait [#allocation3], 16  }
  0x2c   :  { %121 = vsyncadd [#allocation3], 4294967280 }
  0x2d   :  { %74 = vsyncpa [#allocation3], 1 }
  0x2e   :  { %75 = vsyncpa [#allocation4], 1 }

</bundles_post_ra>
